<compile_context>
chip_gen: v5e
topology: v5e:2x2
jax: 0.10.0
libtpu: 0.0.40
codegen_flags: <defaults>
</compile_context>

<pallas_src>
import numpy as np
import jax
import jax.numpy as jnp
from jax.experimental import pallas as pl
from jax.experimental.pallas import tpu as pltpu

# ----------------------------- model hyper-params ---------------------------
KERNEL_NUM = 21
SIGMA = 0.1
EXACT_SIGMA = 0.001
OUT_LAYERS = [10, 5]          # mlp: 21 -> 10 -> 5 -> 1 (ReLU except last layer)


def _gaussian_kernel_params(kernel_num=KERNEL_NUM, sigma=SIGMA,
                            exact_sigma=EXACT_SIGMA):
    mus, sigmas = [], []
    for i in range(kernel_num):
        mu = 1.0 / (kernel_num - 1) + 2.0 * i / (kernel_num - 1) - 1.0
        s = sigma
        if mu > 1.0:
            s = exact_sigma
            mu = 1.0
        mus.append(float(mu))
        sigmas.append(float(s))
    return tuple(mus), tuple(sigmas)


MUS, SIGMAS = _gaussian_kernel_params()


# ------------------------------- Pallas wrapper ------------------------------
def knrm_forward_pallas(q1_tok, d1_tok, q2_tok, d2_tok, emb_matrix,
                        w1, b1, w2, b2, w3, b3):
    """KNRM.forward(input_1, input_2) = sigmoid(predict_1 - predict_2).

    The two predict passes are fused along the batch axis; query and document
    embeddings are gathered in one pass.  Single grid-less pallas_call, all
    operands resident in VMEM.
    """
    bsz, lq = q1_tok.shape
    ld = d1_tok.shape[1]
    b2x = 2 * bsz                     # fused batch: [pass1 ; pass2]
    vocab, dim = emb_matrix.shape
    kn, h1 = w1.shape                 # 21, 10
    h2 = w2.shape[1]                  # 5
    kl = kn * ld                      # 21 * 12 = 252 tiled lane width
    n_tok = b2x * (lq + ld)           # 80 embedded rows

    # ---- wrapper-side input packing (tiny XLA / numpy work, outside kernel) --
    q_tok = jnp.concatenate([q1_tok, q2_tok], axis=0).astype(jnp.int32)  # (2B,Lq)
    d_tok = jnp.concatenate([d1_tok, d2_tok], axis=0).astype(jnp.int32)  # (2B,Ld)
    # flat token vector: all query rows first (fused-batch major), then docs.
    tok = jnp.concatenate([q_tok.reshape(-1), d_tok.reshape(-1)])[:, None]  # (80,1)

    # Gaussian constants + lane-tiling matrix, packed into one (2+Ld, 252) slab:
    #   row 0           : mu_k repeated Ld times each
    #   row 1           : -0.5 / sigma_k^2 repeated Ld times each
    #   rows 2 .. 2+Ld  : tile matrix T, T[d, k*Ld+c] = (d == c)
    mu_row = np.repeat(np.asarray(MUS, np.float32), ld)
    a_row = np.repeat(np.asarray([-0.5 / (s * s) for s in SIGMAS],
                                 np.float32), ld)
    tile_mat = np.tile(np.eye(ld, dtype=np.float32), (1, kn))          # (Ld, 252)
    gpack_np = np.zeros((2 + ld, kl), np.float32)
    gpack_np[0] = mu_row
    gpack_np[1] = a_row
    gpack_np[2:] = tile_mat
    gpack = jnp.asarray(gpack_np)

    # group-sum selection matrix: sel[k*Ld + c, k'] = (k == k')   -> (252, 21)
    sel = jnp.asarray(np.repeat(np.eye(kn, dtype=np.float32), ld, axis=0))

    # MLP params packed into one (35, 10) slab, sliced statically in-kernel.
    mlp = jnp.zeros((kn + h1 + 4, max(h1, h2)), jnp.float32)
    mlp = mlp.at[0:kn, 0:h1].set(w1)                 # rows 0..20   : w1 (21,10)
    mlp = mlp.at[kn, 0:h1].set(b1[0])                # row 21       : b1
    mlp = mlp.at[kn + 1:kn + 1 + h1, 0:h2].set(w2)   # rows 22..31  : w2 (10,5)
    mlp = mlp.at[kn + 1 + h1, 0:h2].set(b2[0])       # row 32       : b2
    mlp = mlp.at[kn + 2 + h1, 0:h2].set(w3[:, 0])    # row 33       : w3^T (1,5)
    mlp = mlp.at[kn + 3 + h1, 0].set(b3[0, 0])       # row 34       : b3

    # ------------------------------- kernel ---------------------------------
    def kernel(tok_ref, emb_ref, gpack_ref, sel_ref, mlp_ref, out_ref):
        # 1. one-hot gather of all 80 token embeddings in a single MXU pass.
        tok_ids = tok_ref[...]                                        # (80,1) i32
        lane_v = jax.lax.broadcasted_iota(jnp.int32, (n_tok, vocab), 1)
        onehot = (tok_ids == lane_v).astype(jnp.float32)              # (80,V)
        e = jnp.dot(onehot, emb_ref[...],
                    preferred_element_type=jnp.float32)               # (80,D)

        # 2. F.normalize(p=2, dim=-1): x * rsqrt(max(|x|^2, eps^2)), eps=1e-12.
        ssq = jnp.sum(e * e, axis=-1, keepdims=True)
        e = e * jax.lax.rsqrt(jnp.maximum(ssq, 1e-24))

        qn = e[0:b2x * lq, :]                                         # (32,D)
        dn = e[b2x * lq:, :]                                          # (48,D)

        # 3. matching matrix: one cross matmul (trans_b) + block-diag extract.
        full = jax.lax.dot_general(qn, dn, (((1,), (1,)), ((), ())),
                                   preferred_element_type=jnp.float32)  # (32,48)
        mm = jnp.concatenate(
            [full[i * lq:(i + 1) * lq, i * ld:(i + 1) * ld]
             for i in range(b2x)], axis=0)                            # (32,Ld)

        # 4. lane-dense Gaussian kernel pooling over all 21 kernels at once.
        mu = gpack_ref[0:1, :]                                        # (1,252)
        a = gpack_ref[1:2, :]                                         # (1,252)
        tmat = gpack_ref[2:2 + ld, :]                                 # (Ld,252)
        mm_t = jnp.dot(mm, tmat, preferred_element_type=jnp.float32)  # (32,252)
        diff = mm_t - mu
        g = jnp.exp(diff * diff * a)                                  # (32,252)
        s_d = jnp.dot(g, sel_ref[...],
                      preferred_element_type=jnp.float32)             # (32,21)
        lg = jnp.log(1.0 + s_d)          # log1p(s), s >= 0 (diff vs log1p ~1e-7)
        ko = jnp.sum(lg.reshape(b2x, lq, kn), axis=1)                 # (2B,21)

        # 5. MLP: Linear(21,10)+ReLU -> Linear(10,5)+ReLU -> Linear(5,1).
        w1_ = mlp_ref[0:kn, 0:h1]
        b1_ = mlp_ref[kn:kn + 1, 0:h1]
        w2_ = mlp_ref[kn + 1:kn + 1 + h1, 0:h2]
        b2_ = mlp_ref[kn + 1 + h1:kn + 2 + h1, 0:h2]
        w3t = mlp_ref[kn + 2 + h1:kn + 3 + h1, 0:h2]
        b3_ = mlp_ref[kn + 3 + h1:kn + 4 + h1, 0:1]

        hh = jnp.maximum(jnp.dot(ko, w1_,
                                 preferred_element_type=jnp.float32) + b1_, 0.0)
        hh = jnp.maximum(jnp.dot(hh, w2_,
                                 preferred_element_type=jnp.float32) + b2_, 0.0)
        # last layer with transposed weights -> logits already as a (1, 2B) row
        logits = jax.lax.dot_general(w3t, hh, (((1,), (1,)), ((), ())),
                                     preferred_element_type=jnp.float32) + b3_

        # 6. forward(): sigmoid(predict(input_1) - predict(input_2)), row-major
        z = logits[:, 0:bsz] - logits[:, bsz:b2x]                     # (1,B)
        out_ref[...] = 1.0 / (1.0 + jnp.exp(-z))

    vmem = pl.BlockSpec(memory_space=pltpu.MemorySpace.VMEM)
    out_row = pl.pallas_call(
        kernel,
        out_shape=jax.ShapeDtypeStruct((1, bsz), jnp.float32),
        in_specs=[vmem] * 5,
        out_specs=vmem,
    )(tok, emb_matrix.astype(jnp.float32), gpack, sel, mlp)
    return out_row.reshape(bsz, 1)


# ------------------------------ pure-JAX reference --------------------------
def knrm_forward_ref(q1_tok, d1_tok, q2_tok, d2_tok, emb_matrix,
                     w1, b1, w2, b2, w3, b3):
    def predict(q_tok, d_tok):
        q = jnp.take(emb_matrix, q_tok, axis=0)
        d = jnp.take(emb_matrix, d_tok, axis=0)
        eps = 1e-12
        qn = q / jnp.maximum(jnp.linalg.norm(q, axis=-1, keepdims=True), eps)
        dn = d / jnp.maximum(jnp.linalg.norm(d, axis=-1, keepdims=True), eps)
        mm = jnp.einsum("bld,brd->blr", qn, dn)
        feats = []
        for mu, sg in zip(MUS, SIGMAS):
            g = jnp.exp(-0.5 * (mm - mu) ** 2 / (sg * sg))
            feats.append(jnp.sum(jnp.log1p(jnp.sum(g, axis=-1)), axis=-1))
        ko = jnp.stack(feats, axis=1)
        h = jax.nn.relu(ko @ w1 + b1)
        h = jax.nn.relu(h @ w2 + b2)
        return h @ w3 + b3

    return jax.nn.sigmoid(predict(q1_tok, d1_tok) - predict(q2_tok, d2_tok))


# ------------------------------------ main -----------------------------------
if __name__ == "__main__":
    key = jax.random.PRNGKey(0)
    (k_emb, k_w1, k_b1, k_w2, k_b2, k_w3, k_b3,
     k_q1, k_d1, k_q2, k_d2) = jax.random.split(key, 11)

    # ---- deterministic "pretrained" parameters (synthetic, not a checkpoint)
    vocab_size, emb_dim = 64, 32
    emb_matrix = jax.random.normal(k_emb, (vocab_size, emb_dim), jnp.float32)
    emb_matrix = emb_matrix.at[0].set(0.0)          # padding_idx = 0

    dims = [KERNEL_NUM] + OUT_LAYERS + [1]          # [21, 10, 5, 1]
    w1 = jax.random.normal(k_w1, (dims[0], dims[1]), jnp.float32) * 0.1
    b1 = jax.random.normal(k_b1, (1, dims[1]), jnp.float32) * 0.1
    w2 = jax.random.normal(k_w2, (dims[1], dims[2]), jnp.float32) * 0.1
    b2 = jax.random.normal(k_b2, (1, dims[2]), jnp.float32) * 0.1
    w3 = jax.random.normal(k_w3, (dims[2], dims[3]), jnp.float32) * 0.1
    b3 = jax.random.normal(k_b3, (1, dims[3]), jnp.float32) * 0.1

    # ---- token-index inputs for the two (query, document) dicts
    batch, len_q, len_d = 2, 8, 12
    q1_tok = jax.random.randint(k_q1, (batch, len_q), 1, vocab_size,
                                dtype=jnp.int32)
    d1_tok = jax.random.randint(k_d1, (batch, len_d), 1, vocab_size,
                                dtype=jnp.int32)
    q2_tok = jax.random.randint(k_q2, (batch, len_q), 1, vocab_size,
                                dtype=jnp.int32)
    d2_tok = jax.random.randint(k_d2, (batch, len_d), 1, vocab_size,
                                dtype=jnp.int32)

    out = knrm_forward_pallas(q1_tok, d1_tok, q2_tok, d2_tok, emb_matrix,
                              w1, b1, w2, b2, w3, b3)
    out = jax.block_until_ready(out)

    ref = knrm_forward_ref(q1_tok, d1_tok, q2_tok, d2_tok, emb_matrix,
                           w1, b1, w2, b2, w3, b3)
    # tolerance accounts for MXU multi-pass f32 matmul rounding on real TPUs;
    # any logic error in the kernel produces errors orders of magnitude larger.
    np.testing.assert_allclose(np.asarray(out), np.asarray(ref),
                               rtol=5e-3, atol=1e-3)

    print("KERNEL_OK")
</pallas_src>

<mosaic_0001>
module attributes {stable_mosaic.version = 11 : i64} {
  func.func @kernel(%arg0: memref<80x1xi32, #tpu.memory_space<vmem>>, %arg1: memref<64x32xf32, #tpu.memory_space<vmem>>, %arg2: memref<14x252xf32, #tpu.memory_space<vmem>>, %arg3: memref<252x21xf32, #tpu.memory_space<vmem>>, %arg4: memref<35x10xf32, #tpu.memory_space<vmem>>, %arg5: memref<1x2xf32, #tpu.memory_space<vmem>>) attributes {dimension_semantics = [], scalar_prefetch = 0 : i64, scratch_operands = 0 : i64, tpu.core_type = #tpu.core_type<tc>} {
    %c0 = arith.constant 0 : index
    %c0_0 = arith.constant 0 : index
    %0 = vector.load %arg0[%c0, %c0_0] : memref<80x1xi32, #tpu.memory_space<vmem>>, vector<80x1xi32>
    %1 = tpu.iota {dimensions = array<i32: 1>} : vector<80x64xi32>
    %2 = vector.broadcast %0 : vector<80x1xi32> to vector<80x64xi32>
    %3 = arith.cmpi eq, %2, %1 : vector<80x64xi32>
    %4 = arith.extui %3 : vector<80x64xi1> to vector<80x64xi32>
    %5 = arith.sitofp %4 : vector<80x64xi32> to vector<80x64xf32>
    %c0_1 = arith.constant 0 : index
    %c0_2 = arith.constant 0 : index
    %6 = vector.load %arg1[%c0_1, %c0_2] : memref<64x32xf32, #tpu.memory_space<vmem>>, vector<64x32xf32>
    %cst = arith.constant dense<0.000000e+00> : vector<80x32xf32>
    %7 = tpu.matmul %5, %6, %cst {dimension_numbers = #tpu.dot_dimension_numbers<[1], [0], [0], [1], [0, 0, 1, 1], [], []>} : vector<80x64xf32>, vector<64x32xf32>, vector<80x32xf32> -> vector<80x32xf32>
    %8 = arith.mulf %7, %7 : vector<80x32xf32>
    %cst_3 = arith.constant dense<0.000000e+00> : vector<80xf32>
    %9 = vector.multi_reduction <add>, %8, %cst_3 [1] : vector<80x32xf32> to vector<80xf32>
    %10 = vector.shape_cast %9 : vector<80xf32> to vector<80x1xf32>
    %cst_4 = arith.constant 1.000000e-24 : f32
    %11 = vector.broadcast %cst_4 : f32 to vector<80x1xf32>
    %12 = arith.maximumf %10, %11 : vector<80x1xf32>
    %13 = math.rsqrt %12 : vector<80x1xf32>
    %14 = vector.broadcast %13 : vector<80x1xf32> to vector<80x32xf32>
    %15 = arith.mulf %7, %14 : vector<80x32xf32>
    %16 = vector.extract_strided_slice %15 {offsets = [0, 0], sizes = [32, 32], strides = [1, 1]} : vector<80x32xf32> to vector<32x32xf32>
    %17 = vector.extract_strided_slice %15 {offsets = [32, 0], sizes = [48, 32], strides = [1, 1]} : vector<80x32xf32> to vector<48x32xf32>
    %cst_5 = arith.constant dense<0.000000e+00> : vector<32x48xf32>
    %18 = tpu.matmul %16, %17, %cst_5 {dimension_numbers = #tpu.dot_dimension_numbers<[1], [1], [0], [0], [0, 0, 1, 0], [], []>} : vector<32x32xf32>, vector<48x32xf32>, vector<32x48xf32> -> vector<32x48xf32>
    %19 = vector.extract_strided_slice %18 {offsets = [0, 0], sizes = [8, 12], strides = [1, 1]} : vector<32x48xf32> to vector<8x12xf32>
    %20 = vector.extract_strided_slice %18 {offsets = [8, 12], sizes = [8, 12], strides = [1, 1]} : vector<32x48xf32> to vector<8x12xf32>
    %21 = vector.extract_strided_slice %18 {offsets = [16, 24], sizes = [8, 12], strides = [1, 1]} : vector<32x48xf32> to vector<8x12xf32>
    %22 = vector.extract_strided_slice %18 {offsets = [24, 36], sizes = [8, 12], strides = [1, 1]} : vector<32x48xf32> to vector<8x12xf32>
    %23 = tpu.concatenate %19, %20, %21, %22 in 0 : vector<8x12xf32>, vector<8x12xf32>, vector<8x12xf32>, vector<8x12xf32> -> vector<32x12xf32>
    %c0_6 = arith.constant 0 : index
    %c0_7 = arith.constant 0 : index
    %24 = vector.load %arg2[%c0_6, %c0_7] : memref<14x252xf32, #tpu.memory_space<vmem>>, vector<1x252xf32>
    %c1 = arith.constant 1 : index
    %c0_8 = arith.constant 0 : index
    %25 = vector.load %arg2[%c1, %c0_8] : memref<14x252xf32, #tpu.memory_space<vmem>>, vector<1x252xf32>
    %c2 = arith.constant 2 : index
    %c0_9 = arith.constant 0 : index
    %26 = vector.load %arg2[%c2, %c0_9] : memref<14x252xf32, #tpu.memory_space<vmem>>, vector<12x252xf32>
    %cst_10 = arith.constant dense<0.000000e+00> : vector<32x252xf32>
    %27 = tpu.matmul %23, %26, %cst_10 {dimension_numbers = #tpu.dot_dimension_numbers<[1], [0], [0], [1], [0, 0, 1, 1], [], []>} : vector<32x12xf32>, vector<12x252xf32>, vector<32x252xf32> -> vector<32x252xf32>
    %28 = vector.broadcast %24 : vector<1x252xf32> to vector<32x252xf32>
    %29 = arith.subf %27, %28 : vector<32x252xf32>
    %30 = arith.mulf %29, %29 : vector<32x252xf32>
    %31 = vector.broadcast %25 : vector<1x252xf32> to vector<32x252xf32>
    %32 = arith.mulf %30, %31 : vector<32x252xf32>
    %33 = math.exp %32 : vector<32x252xf32>
    %c0_11 = arith.constant 0 : index
    %c0_12 = arith.constant 0 : index
    %34 = vector.load %arg3[%c0_11, %c0_12] : memref<252x21xf32, #tpu.memory_space<vmem>>, vector<252x21xf32>
    %cst_13 = arith.constant dense<0.000000e+00> : vector<32x21xf32>
    %35 = tpu.matmul %33, %34, %cst_13 {dimension_numbers = #tpu.dot_dimension_numbers<[1], [0], [0], [1], [0, 0, 1, 1], [], []>} : vector<32x252xf32>, vector<252x21xf32>, vector<32x21xf32> -> vector<32x21xf32>
    %cst_14 = arith.constant 1.000000e+00 : f32
    %36 = vector.broadcast %cst_14 : f32 to vector<32x21xf32>
    %37 = arith.addf %36, %35 : vector<32x21xf32>
    %38 = math.log %37 : vector<32x21xf32>
    %39 = vector.shape_cast %38 : vector<32x21xf32> to vector<4x8x21xf32>
    %cst_15 = arith.constant dense<0.000000e+00> : vector<4x21xf32>
    %40 = vector.multi_reduction <add>, %39, %cst_15 [1] : vector<4x8x21xf32> to vector<4x21xf32>
    %c0_16 = arith.constant 0 : index
    %c0_17 = arith.constant 0 : index
    %41 = vector.load %arg4[%c0_16, %c0_17] : memref<35x10xf32, #tpu.memory_space<vmem>>, vector<21x10xf32>
    %c21 = arith.constant 21 : index
    %c0_18 = arith.constant 0 : index
    %42 = vector.load %arg4[%c21, %c0_18] : memref<35x10xf32, #tpu.memory_space<vmem>>, vector<1x10xf32>
    %c22 = arith.constant 22 : index
    %c0_19 = arith.constant 0 : index
    %43 = vector.load %arg4[%c22, %c0_19] : memref<35x10xf32, #tpu.memory_space<vmem>>, vector<10x5xf32>
    %c32 = arith.constant 32 : index
    %c0_20 = arith.constant 0 : index
    %44 = vector.load %arg4[%c32, %c0_20] : memref<35x10xf32, #tpu.memory_space<vmem>>, vector<1x5xf32>
    %c33 = arith.constant 33 : index
    %c0_21 = arith.constant 0 : index
    %45 = vector.load %arg4[%c33, %c0_21] : memref<35x10xf32, #tpu.memory_space<vmem>>, vector<1x5xf32>
    %c34 = arith.constant 34 : index
    %c0_22 = arith.constant 0 : index
    %46 = vector.load %arg4[%c34, %c0_22] : memref<35x10xf32, #tpu.memory_space<vmem>>, vector<1x1xf32>
    %cst_23 = arith.constant dense<0.000000e+00> : vector<4x10xf32>
    %47 = tpu.matmul %40, %41, %cst_23 {dimension_numbers = #tpu.dot_dimension_numbers<[1], [0], [0], [1], [0, 0, 1, 1], [], []>} : vector<4x21xf32>, vector<21x10xf32>, vector<4x10xf32> -> vector<4x10xf32>
    %48 = vector.broadcast %42 : vector<1x10xf32> to vector<4x10xf32>
    %49 = arith.addf %47, %48 : vector<4x10xf32>
    %cst_24 = arith.constant 0.000000e+00 : f32
    %50 = vector.broadcast %cst_24 : f32 to vector<4x10xf32>
    %51 = arith.maximumf %49, %50 : vector<4x10xf32>
    %cst_25 = arith.constant dense<0.000000e+00> : vector<4x5xf32>
    %52 = tpu.matmul %51, %43, %cst_25 {dimension_numbers = #tpu.dot_dimension_numbers<[1], [0], [0], [1], [0, 0, 1, 1], [], []>} : vector<4x10xf32>, vector<10x5xf32>, vector<4x5xf32> -> vector<4x5xf32>
    %53 = vector.broadcast %44 : vector<1x5xf32> to vector<4x5xf32>
    %54 = arith.addf %52, %53 : vector<4x5xf32>
    %cst_26 = arith.constant 0.000000e+00 : f32
    %55 = vector.broadcast %cst_26 : f32 to vector<4x5xf32>
    %56 = arith.maximumf %54, %55 : vector<4x5xf32>
    %cst_27 = arith.constant dense<0.000000e+00> : vector<1x4xf32>
    %57 = tpu.matmul %45, %56, %cst_27 {dimension_numbers = #tpu.dot_dimension_numbers<[1], [1], [0], [0], [0, 0, 1, 0], [], []>} : vector<1x5xf32>, vector<4x5xf32>, vector<1x4xf32> -> vector<1x4xf32>
    %58 = vector.broadcast %46 : vector<1x1xf32> to vector<1x4xf32>
    %59 = arith.addf %57, %58 : vector<1x4xf32>
    %60 = vector.extract_strided_slice %59 {offsets = [0, 0], sizes = [1, 2], strides = [1, 1]} : vector<1x4xf32> to vector<1x2xf32>
    %61 = vector.extract_strided_slice %59 {offsets = [0, 2], sizes = [1, 2], strides = [1, 1]} : vector<1x4xf32> to vector<1x2xf32>
    %62 = arith.subf %60, %61 : vector<1x2xf32>
    %cst_28 = arith.constant 0.000000e+00 : f32
    %63 = vector.broadcast %cst_28 : f32 to vector<1x2xf32>
    %64 = arith.subf %63, %62 : vector<1x2xf32>
    %65 = math.exp %64 : vector<1x2xf32>
    %cst_29 = arith.constant 1.000000e+00 : f32
    %66 = vector.broadcast %cst_29 : f32 to vector<1x2xf32>
    %67 = arith.addf %66, %65 : vector<1x2xf32>
    %cst_30 = arith.constant 1.000000e+00 : f32
    %68 = vector.broadcast %cst_30 : f32 to vector<1x2xf32>
    %69 = arith.divf %68, %67 : vector<1x2xf32>
    %c0_31 = arith.constant 0 : index
    %c0_32 = arith.constant 0 : index
    %70 = vector.load %arg5[%c0_31, %c0_32] : memref<1x2xf32, #tpu.memory_space<vmem>>, vector<1x2xf32>
    tpu.vector_store %arg5[%c0_31, %c0_32], %69 {strides = array<i32>} : memref<1x2xf32, #tpu.memory_space<vmem>>, vector<1x2xf32>,
    return
  }
}

</mosaic_0001>

<bundles_post_ra>
// kernel: tpu_custom_call.1
= control target key start
LH: loop header
LB: loop body
LE: loop exit
PB: predicated region body
PF: predicated region fallthrough
CT: control target
= control target key end

     0   :  { %v991_v2 = vmov 0   ;;  %s1375_s0 = inlined_call_operand.vmem [shape: s32[80,1], index: 0, kind: input, shape index: {}]   ;;  %s1376_s1 = inlined_call_operand.vmem [shape: f32[64,32], index: 1, kind: input, shape index: {}]   ;;  %s1377_s2 = inlined_call_operand.vmem [shape: f32[14,252], index: 2, kind: input, shape index: {}]   ;;  %s1378_s3 = inlined_call_operand.vmem [shape: f32[252,21], index: 3, kind: input, shape index: {}]   ;;  %s1379_s4 = inlined_call_operand.vmem [shape: f32[35,10], index: 4, kind: input, shape index: {}]   ;;  %s1380_s5 = inlined_call_operand.hbm [shape: f32[1,2], index: 5, kind: output, shape index: {}]  }
   0x1   :  { %v23_v0 = vld [vmem:[%s1375_s0 + $0x10] sm:$0xff]  ;;  %v21_v1 = vld [vmem:[%s1375_s0] sm:$0xff]  ;;  %913 = vset.pattern.permute.xlu1 %v991_v2  ;;  %912 = vset.pattern.permute.xlu0 %v991_v2  ;;  %v100_v4 = vld [vmem:[%s1376_s1 + $0x38] sm:$0xff] }
   0x2   :  { %40 = vperm.xlu1 %913, %v23_v0   ;;  %34 = vperm.xlu0 %912, %v21_v1   ;;  %v25_v3 = vld [vmem:[%s1375_s0 + $0x20] sm:$0xff]  ;;  %v99_v5 = vld [vmem:[%s1376_s1 + $0x30] sm:$0xff]  ;;  %v98_v6 = vld [vmem:[%s1376_s1 + $0x28] sm:$0xff] }
   0x3   :  { %914 = vset.pattern.permute.xlu2 %v991_v2  ;;  %140 = vmatpush.msra.mxu0 %v100_v4 }
   0x4   :  { %46 = vperm.xlu2 %914, %v25_v3   ;;  %897 = vmatpush.msra.mxu3 %v100_v4 }
   0x5   :  { %141 = vmatpush.msra.mxu0 %v99_v5 }
   0x6   :  { %10 = vsyncpa [#allocation3], 0  ;;  %v24_v7 = vld [vmem:[%s1375_s0 + $0x18] sm:$0xff]  ;;  %v22_v8 = vld [vmem:[%s1375_s0 + $0x8] sm:$0xff]  ;;  %898 = vmatpush.msra.mxu3 %v99_v5  ;;  %v31_v19 = vlaneseq  ;;  %vm101_vm0 = vcmask 523264   ;;  %v992_v23 = vmov 0.0  }
   0x7   :  { %142 = vmatpush.msra.mxu0 %v98_v6  ;;  %v97_v9 = vld [vmem:[%s1376_s1 + $0x20] sm:$0xff]  ;;  %v26_v10 = vld [vmem:[%s1375_s0 + $0x28] sm:$0xff]  ;;  %v96_v11 = vld [vmem:[%s1376_s1 + $0x18] sm:$0xff]  ;;  %vm189_vm11 = vcmask 261120   ;;  %s993_s10 = smov 116   ;;  %s994_s13 = smov 104  }
   0x8   :  { %899 = vmatpush.msra.mxu3 %v98_v6  ;;  %v95_v12 = vld [vmem:[%s1376_s1 + $0x10] sm:$0xff]  ;;  %v94_v13 = vld [vmem:[%s1376_s1 + $0x8] sm:$0xff]  ;;  %v28_v16 = vld [vmem:[%s1375_s0 + $0x38] sm:$0xff]  ;;  %v32_v20 = vand.u32 127, %v31_v19  ;;  %s995_s14 = smov 92   ;;  %s996_s16 = smov 126  }
   0x9   :  { %143 = vmatpush.msra.mxu0 %v97_v9  ;;  %v30_v14 = vld [vmem:[%s1375_s0 + $0x48] sm:$0xff]  ;;  %v27_v15 = vld [vmem:[%s1375_s0 + $0x30] sm:$0xff]  ;;  %v29_v17 = vld [vmem:[%s1375_s0 + $0x40] sm:$0xff]  ;;  %s836_s20 = sshll.u32 %s1380_s5, 4  ;;  %s837_s20 = int_to_ptr.hbm [resolvable:$true] %s836_s20 }
   0xa   :  { %43 = vperm.xlu1 %913, %v24_v7   ;;  %37 = vperm.xlu0 %912, %v22_v8   ;;  %v93_v18 = vld [vmem:[%s1376_s1] sm:$0xff] }
   0xb   :  { %900 = vmatpush.msra.mxu3 %v97_v9  ;;  %144 = vmatpush.msra.mxu0 %v96_v11 }
   0xc   :  { %49 = vperm.xlu2 %914, %v26_v10  }
   0xd   :  { %901 = vmatpush.msra.mxu3 %v96_v11  ;;  %145 = vmatpush.msra.mxu0 %v95_v12 }
   0xf   :  { %902 = vmatpush.msra.mxu3 %v95_v12  ;;  %146 = vmatpush.msra.mxu0 %v94_v13 }
  0x11   :  { %903 = vmatpush.msra.mxu3 %v94_v13  ;;  %147 = vmatpush.msra.mxu0 %v93_v18 }
  0x12   :  { %61 = vperm.xlu1 %913, %v30_v14   ;;  %52 = vperm.xlu0 %912, %v27_v15  }
  0x13   :  { %904 = vmatpush.msra.mxu3 %v93_v18 }
  0x14   :  { %55 = vperm.xlu2 %914, %v28_v16  }
  0x1a   :  { %58 = vperm.xlu0 %912, %v29_v17  }
  0x5e   :  { %v47_v35 = vpop.permute.xlu2 %46 }
  0x5f   :  { %vm67_vm7 = vcmp.eq.s32.totalorder %v47_v35, %v32_v20 }
  0x60   :  { %v849_v36 = vsel %vm67_vm7, 1.0, %v992_v23 }
  0x66   :  { %v50_v37 = vpop.permute.xlu2 %49 }
  0x67   :  { %vm68_vm8 = vcmp.eq.s32.totalorder %v50_v37, %v32_v20 }
  0x68   :  { %v850_v38 = vsel %vm68_vm8, 1.0, %v992_v23 }
  0x6e   :  { %v56_v40 = vpop.permute.xlu2 %55 }
  0x6f   :  { %vm70_vm10 = vcmp.eq.s32.totalorder %v56_v40, %v32_v20 }
  0x70   :  { %v852_v41 = vsel %vm70_vm10, 1.0, %v992_v23 }
  0x74   :  { %v41_v21 = vpop.permute.xlu1 %40  ;;  %v35_v22 = vpop.permute.xlu0 %34 }
  0x75   :  { %vm63_vm1 = vcmp.eq.s32.totalorder %v35_v22, %v32_v20  ;;  %vm65_vm3 = vcmp.eq.s32.totalorder %v41_v21, %v32_v20 }
  0x76   :  { %v845_v24 = vsel %vm63_vm1, 1.0, %v992_v23  ;;  %v847_v28 = vsel %vm65_vm3, 1.0, %v992_v23 }
  0x77   :  { %855 = vmatmul.msk.f32.vlgmr.msra.gmra.mxu0 %vm101_vm0, %v845_v24 }
  0x7c   :  { %v44_v25 = vpop.permute.xlu1 %43  ;;  %v38_v26 = vpop.permute.xlu0 %37 }
  0x7d   :  { %vm64_vm2 = vcmp.eq.s32.totalorder %v38_v26, %v32_v20  ;;  %vm66_vm5 = vcmp.eq.s32.totalorder %v44_v25, %v32_v20 }
  0x7e   :  { %v846_v27 = vsel %vm64_vm2, 1.0, %v992_v23  ;;  %v848_v33 = vsel %vm66_vm5, 1.0, %v992_v23 }
  0x7f   :  { %856 = vmatmul.msk.f32.gmra.mxu0 %vm101_vm0, %v846_v27 }
  0x84   :  { %v62_v29 = vpop.permute.xlu1 %61  ;;  %v53_v30 = vpop.permute.xlu0 %52 }
  0x85   :  { %vm72_vm4 = vcmp.eq.s32.totalorder %v62_v29, %v32_v20  ;;  %vm69_vm9 = vcmp.eq.s32.totalorder %v53_v30, %v32_v20 }
  0x86   :  { %v854_v31 = vsel %vm72_vm4, 1.0, %v992_v23  ;;  %v851_v39 = vsel %vm69_vm9, 1.0, %v992_v23 }
  0x87   :  { %857 = vmatmul.msk.f32.gmra.mxu0 %vm101_vm0, %v847_v28  ;;  %864 = vmatmul.msk.f32.vlgmr.msra.gmra.mxu3 %vm101_vm0, %v854_v31 }
  0x8c   :  { %v59_v32 = vpop.permute.xlu0 %58 }
  0x8d   :  { %vm71_vm6 = vcmp.eq.s32.totalorder %v59_v32, %v32_v20 }
  0x8e   :  { %v853_v34 = vsel %vm71_vm6, 1.0, %v992_v23 }
  0x8f   :  { %858 = vmatmul.msk.f32.gmra.mxu0 %vm101_vm0, %v848_v33 }
  0x97   :  { %859 = vmatmul.msk.f32.gmra.mxu0 %vm101_vm0, %v849_v36 }
  0x9f   :  { %860 = vmatmul.msk.f32.gmra.mxu0 %vm101_vm0, %v850_v38 }
  0xa7   :  { %861 = vmatmul.msk.f32.gmra.mxu0 %vm101_vm0, %v851_v39 }
  0xaf   :  { %862 = vmatmul.msk.f32.gmra.mxu0 %vm101_vm0, %v852_v41 }
  0xb7   :  { %863 = vmatmul.msk.f32.gmra.mxu0 %vm101_vm0, %v853_v34 }
  0xf4   :  { %v1092_v42 = vpop.f32.mrf.mxu0 }
  0xf5   :  { %v179_v59 = vmul.f32 %v1092_v42, %v1092_v42 }
  0xf7   :  { %v190_v62 = vsel %vm189_vm11, %v179_v59, 0.0 }
  0xfc   :  { %v1094_v43 = vpop.f32.mrf.mxu0 }
  0xfd   :  { %v180_v53 = vmul.f32 %v1094_v43, %v1094_v43 }
  0xff   :  { %v193_v55 = vsel %vm189_vm11, %v180_v53, 0.0 }
 0x104   :  { %v1096_v44 = vpop.f32.mrf.mxu0 }
 0x105   :  { %v181_v6 = vmul.f32 %v1096_v44, %v1096_v44 }
 0x107   :  { %v196_v7 = vsel %vm189_vm11, %v181_v6, 0.0 }
 0x10a   :  { %v176_v45 = vpop.f32.mrf.mxu3 }
 0x10b   :  { %v188_v46 = vmul.f32 %v176_v45, %v176_v45 }
 0x10c   :  { %v1098_v47 = vpop.f32.mrf.mxu0 }
 0x10d   :  { %v217_v48 = vsel %vm189_vm11, %v188_v46, 0.0  ;;  %v182_v0 = vmul.f32 %v1098_v47, %v1098_v47 }
 0x10e   :  { %218 = vadd.xlane.f32.xlu1 %v217_v48 }
 0x10f   :  { %v199_v2 = vsel %vm189_vm11, %v182_v0, 0.0 }
 0x114   :  { %v1101_v49 = vpop.f32.mrf.mxu0 }
 0x115   :  { %v183_v4 = vmul.f32 %v1101_v49, %v1101_v49 }
 0x117   :  { %v202_v5 = vsel %vm189_vm11, %v183_v4, 0.0 }
 0x11c   :  { %v1103_v50 = vpop.f32.mrf.mxu0 }
 0x11d   :  { %v184_v51 = vmul.f32 %v1103_v50, %v1103_v50 }
 0x11f   :  { %v205_v52 = vsel %vm189_vm11, %v184_v51, 0.0 }
 0x120   :  { %206 = vadd.xlane.f32.xlu1 %v205_v52 }
 0x124   :  { %v1110_v54 = vpop.f32.mrf.mxu0 }
 0x125   :  { %v185_v1 = vmul.f32 %v1110_v54, %v1110_v54 }
 0x127   :  { %v208_v3 = vsel %vm189_vm11, %v185_v1, 0.0 }
 0x128   :  { %194 = vadd.xlane.f32.xlu1 %v193_v55 }
 0x12c   :  { %v1113_v56 = vpop.f32.mrf.mxu0 }
 0x12d   :  { %v186_v57 = vmul.f32 %v1113_v56, %v1113_v56 }
 0x12f   :  { %v211_v58 = vsel %vm189_vm11, %v186_v57, 0.0 }
 0x130   :  { %212 = vadd.xlane.f32.xlu0 %v211_v58 }
 0x134   :  { %v1120_v60 = vpop.f32.mrf.mxu0 }
 0x135   :  { %v187_v61 = vmul.f32 %v1120_v60, %v1120_v60 }
 0x137   :  { %v214_v63 = vsel %vm189_vm11, %v187_v61, 0.0 }
 0x138   :  { %191 = vadd.xlane.f32.xlu0 %v190_v62  ;;  %215 = vadd.xlane.f32.xlu2 %v214_v63 }
 0x140   :  { %200 = vadd.xlane.f32.xlu0 %v199_v2  ;;  %209 = vadd.xlane.f32.xlu2 %v208_v3 }
 0x148   :  { %203 = vadd.xlane.f32.xlu2 %v202_v5 }
 0x150   :  { %197 = vadd.xlane.f32.xlu2 %v196_v7 }
 0x181   :  { %v219_v8 = vpop.xlane.xlu1 %218 }
 0x182   :  { %v229_v9 = vmax.f32 %v219_v8, 1e-24 }
 0x184   :  { %917 = vrsqrt.f32 %v229_v9  ;;  %vm326_vm13 = vweird.f32 %v229_v9 }
 0x18a   :  { %v918_v10 = vpop.eup %917 }
 0x18b   :  { %v321_v11 = vmul.f32 %v918_v10, %v229_v9  ;;  %vm327_vm12 = vweird.f32 %v918_v10 }
 0x18c   :  { %vm328_vm14 = vmor %vm326_vm13, %vm327_vm12 }
 0x18d   :  { %v322_v12 = vmul.f32 %v918_v10, %v321_v11 }
 0x18f   :  { %v323_v13 = vmul.f32 0.5, %v322_v12 }
 0x191   :  { %v324_v14 = vsub.f32 1.5, %v323_v13 }
 0x193   :  { %v325_v15 = vmul.f32 %v918_v10, %v324_v14  ;;  %v207_v19 = vpop.xlane.xlu1 %206 }
 0x194   :  { %v1139_v21 = vmax.f32 %v207_v19, 1e-24 }
 0x195   :  { %v329_v16 = vsel %vm328_vm14, %v918_v10, %v325_v15 }
 0x196   :  { %v339_v17 = vmul.f32 %v329_v16, %v176_v45  ;;  %vm286_vm9 = vweird.f32 %v1139_v21 }
 0x198   :  { %865 = vmatpush.xpose.msk.msra.mxu1 %vm189_vm11, %v339_v17 }
 0x19b   :  { %v195_v33 = vpop.xlane.xlu1 %194 }
 0x19c   :  { %v1149_v37 = vmax.f32 %v195_v33, 1e-24 }
 0x1a3   :  { %v213_v18 = vpop.xlane.xlu0 %212 }
 0x1a4   :  { %v227_v20 = vmax.f32 %v213_v18, 1e-24 }
 0x1a6   :  { %919 = vrsqrt.f32 %v227_v20  ;;  %vm306_vm3 = vweird.f32 %v227_v20 }
 0x1a7   :  { %921 = vrsqrt.f32 %v1139_v21 }
 0x1ab   :  { %v216_v22 = vpop.xlane.xlu2 %215  ;;  %v192_v25 = vpop.xlane.xlu0 %191 }
 0x1ac   :  { %v920_v23 = vpop.eup %919  ;;  %v228_v24 = vmax.f32 %v216_v22, 1e-24  ;;  %v1142_v27 = vmax.f32 %v192_v25, 1e-24 }
 0x1ad   :  { %v301_v26 = vmul.f32 %v920_v23, %v227_v20  ;;  %v1144_v28 = vpop.eup %921  ;;  %vm307_vm0 = vweird.f32 %v920_v23 }
 0x1ae   :  { %923 = vrsqrt.f32 %v228_v24  ;;  %v281_v32 = vmul.f32 %v1144_v28, %v1139_v21  ;;  %vm316_vm1 = vweird.f32 %v228_v24  ;;  %vm1157_vm4 = vmor %vm306_vm3, %vm307_vm0  ;;  %vm287_vm5 = vweird.f32 %v1144_v28 }
 0x1af   :  { %v302_v29 = vmul.f32 %v920_v23, %v301_v26  ;;  %925 = vrsqrt.f32 %v1142_v27  ;;  %vm288_vm10 = vmor %vm286_vm9, %vm287_vm5  ;;  %vm236_vm0 = vweird.f32 %v1142_v27 }
 0x1b0   :  { %v282_v39 = vmul.f32 %v1144_v28, %v281_v32 }
 0x1b1   :  { %v303_v35 = vmul.f32 0.5, %v302_v29 }
 0x1b2   :  { %v283_v52 = vmul.f32 0.5, %v282_v39 }
 0x1b3   :  { %v210_v30 = vpop.xlane.xlu2 %209  ;;  %v304_v41 = vsub.f32 1.5, %v303_v35 }
 0x1b4   :  { %v924_v31 = vpop.eup %923  ;;  %v226_v34 = vmax.f32 %v210_v30, 1e-24  ;;  %v284_v3 = vsub.f32 1.5, %v283_v52 }
 0x1b5   :  { %v311_v36 = vmul.f32 %v924_v31, %v228_v24  ;;  %v1152_v40 = vpop.eup %925  ;;  %vm317_vm15 = vweird.f32 %v924_v31  ;;  %v305_v59 = vmul.f32 %v920_v23, %v304_v41 }
 0x1b6   :  { %927 = vrsqrt.f32 %v226_v34  ;;  %v231_v53 = vmul.f32 %v1152_v40, %v1142_v27  ;;  %vm318_vm2 = vmor %vm316_vm1, %vm317_vm15  ;;  %vm296_vm7 = vweird.f32 %v226_v34  ;;  %v285_v15 = vmul.f32 %v1144_v28, %v284_v3 }
 0x1b7   :  { %v312_v38 = vmul.f32 %v924_v31, %v311_v36  ;;  %929 = vrsqrt.f32 %v1149_v37  ;;  %v309_v5 = vsel %vm1157_vm4, %v920_v23, %v305_v59  ;;  %vm237_vm13 = vweird.f32 %v1152_v40  ;;  %v411_v59 = vld [vmem:[%s1377_s2] sm:$0xfc] }
 0x1b8   :  { %v232_v0 = vmul.f32 %v1152_v40, %v231_v53  ;;  %v337_v12 = vmul.f32 %v309_v5, %v1113_v56  ;;  %v289_v23 = vsel %vm288_vm10, %v1144_v28, %v285_v15  ;;  %v413_v28 = vld [vmem:[%s1377_s2 + $0x10] sm:$0x3f]  ;;  %vm438_vm15 = vcmask 1043456   ;;  %v566_v5 = vld [vmem:[%s1378_s3 + $0x78] sm:$0xff] }
 0x1b9   :  { %v313_v45 = vmul.f32 0.5, %v312_v38  ;;  %v335_v26 = vmul.f32 %v289_v23, %v1103_v50  ;;  %v421_v50 = vrot.slane %v413_v28, 2  ;;  %vm246_vm4 = vweird.f32 %v1149_v37  ;;  %v577_v15 = vld [vmem:[%s1378_s3 + $0xd0] sm:$0xff] }
 0x1ba   :  { %v233_v10 = vmul.f32 0.5, %v232_v0  ;;  %v573_v23 = vld [vmem:[%s1378_s3 + $0xb0] sm:$0xff] }
 0x1bb   :  { %v314_v46 = vsub.f32 1.5, %v313_v45  ;;  %v204_v48 = vpop.xlane.xlu2 %203  ;;  %876 = vmatpush.msk.msra.mxu2 %vm438_vm15, %v421_v50  ;;  %v569_v28 = vld [vmem:[%s1378_s3 + $0x90] sm:$0xff] }
 0x1bc   :  { %v928_v51 = vpop.eup %927  ;;  %v224_v55 = vmax.f32 %v204_v48, 1e-24  ;;  %v234_v19 = vsub.f32 1.5, %v233_v10  ;;  %v580_v10 = vld [vmem:[%s1378_s3 + $0xe8] sm:$0xff] }
 0x1bd   :  { %v291_v57 = vmul.f32 %v928_v51, %v226_v34  ;;  %v315_v58 = vmul.f32 %v924_v31, %v314_v46  ;;  %v1163_v2 = vpop.eup %929  ;;  %vm297_vm6 = vweird.f32 %v928_v51 }
 0x1be   :  { %931 = vrsqrt.f32 %v224_v55  ;;  %v241_v9 = vmul.f32 %v1163_v2, %v1149_v37  ;;  %vm298_vm8 = vmor %vm296_vm7, %vm297_vm6  ;;  %v235_v29 = vmul.f32 %v1152_v40, %v234_v19  ;;  %vm276_vm14 = vweird.f32 %v224_v55  ;;  %v558_v19 = vld [vmem:[%s1378_s3 + $0x38] sm:$0xff] }
 0x1bf   :  { %v292_v61 = vmul.f32 %v928_v51, %v291_v57  ;;  %v319_v62 = vsel %vm318_vm2, %v924_v31, %v315_v58  ;;  %v414_v31 = vld [vmem:[%s1377_s2 + $0x18] sm:$0x3f]  ;;  %vm238_vm2 = vmor %vm236_vm0, %vm237_vm13  ;;  %vm247_vm3 = vweird.f32 %v1163_v2  ;;  %vm419_vm13 = vcmask 1045504  }
 0x1c0   :  { %v338_v1 = vmul.f32 %v319_v62, %v1120_v60  ;;  %v201_v60 = vpop.xlane.xlu0 %200  ;;  %v242_v56 = vmul.f32 %v1163_v2, %v241_v9  ;;  %v424_v32 = vrot.slane %v414_v31, 2  ;;  %v239_v38 = vsel %vm238_vm2, %v1152_v40, %v235_v29  ;;  %vm248_vm5 = vmor %vm246_vm4, %vm247_vm3  ;;  %v564_v9 = vld [vmem:[%s1378_s3 + $0x68] sm:$0xff]  ;;  %v554_v29 = vld [vmem:[%s1378_s3 + $0x18] sm:$0xff] }
 0x1c1   :  { %v293_v4 = vmul.f32 0.5, %v292_v61  ;;  %v1178_v16 = vmax.f32 %v201_v60, 1e-24  ;;  %v330_v27 = vmul.f32 %v239_v38, %v1092_v42  ;;  %v420_v61 = vrot.slane %v411_v59, 2  ;;  %v563_v60 = vld [vmem:[%s1378_s3 + $0x60] sm:$0xff]  ;;  %v552_v31 = vld [vmem:[%s1378_s3 + $0x8] sm:$0xff] }
 0x1c2   :  { %866 = vmatpush.xpose.msk.msra.mxu1 %vm189_vm11, %v338_v1  ;;  %v243_v25 = vmul.f32 0.5, %v242_v56  ;;  %881 = vmatpush.msk.msrb.mxu3 %vm438_vm15, %v424_v32  ;;  %v575_v56 = vld [vmem:[%s1378_s3 + $0xc0] sm:$0xff]  ;;  %vm665_vm0 = vcmask 171008   ;;  %vm710_vm2 = vcmask 1042434   ;;  %vm712_vm3 = vcmask 1043459  }
 0x1c3   :  { %v294_v6 = vsub.f32 1.5, %v293_v4  ;;  %v198_v7 = vpop.xlane.xlu2 %197  ;;  %vm266_vm10 = vweird.f32 %v1178_v16  ;;  %v422_v63 = vsel %vm419_vm13, %v420_v61, %v421_v50  ;;  %v568_v50 = vld [vmem:[%s1378_s3 + $0x88] sm:$0xff]  ;;  %vm746_vm4 = vcmask 1041408  }
 0x1c4   :  { %v932_v8 = vpop.eup %931  ;;  %v1171_v11 = vmax.f32 %v198_v7, 1e-24  ;;  %v244_v34 = vsub.f32 1.5, %v243_v25  ;;  %458 = vmatpush.msra.mxu2 %v422_v63  ;;  %v565_v7 = vld [vmem:[%s1378_s3 + $0x70] sm:$0xff]  ;;  %v555_v25 = vld [vmem:[%s1378_s3 + $0x20] sm:$0xff] }
 0x1c5   :  { %v271_v13 = vmul.f32 %v932_v8, %v224_v55  ;;  %v295_v14 = vmul.f32 %v928_v51, %v294_v6  ;;  %vm277_vm12 = vweird.f32 %v932_v8  ;;  %v582_v6 = vld [vmem:[%s1378_s3 + $0xf8] sm:$0xf] }
 0x1c6   :  { %933 = vrsqrt.f32 %v1171_v11  ;;  %867 = vmatpush.xpose.msk.msra.mxu1 %vm189_vm11, %v337_v12  ;;  %vm278_vm1 = vmor %vm276_vm14, %vm277_vm12  ;;  %v245_v46 = vmul.f32 %v1163_v2, %v244_v34  ;;  %vm256_vm7 = vweird.f32 %v1171_v11  ;;  %vm428_vm14 = vcmask 97280   ;;  %599 = vmatpush.msrb.mxu2 %v566_v5  ;;  %v562_v12 = vld [vmem:[%s1378_s3 + $0x58] sm:$0xff] }
 0x1c7   :  { %v272_v17 = vmul.f32 %v932_v8, %v271_v13  ;;  %v299_v18 = vsel %vm298_vm8, %v928_v51, %v295_v14  ;;  %935 = vrsqrt.f32 %v1178_v16  ;;  %v578_v13 = vld [vmem:[%s1378_s3 + $0xd8] sm:$0xff]  ;;  %v561_v14 = vld [vmem:[%s1378_s3 + $0x50] sm:$0xff] }
 0x1c8   :  { %v336_v20 = vmul.f32 %v299_v18, %v1110_v54  ;;  %v249_v48 = vsel %vm248_vm5, %v1163_v2, %v245_v46  ;;  %v702_v2 = vld [vmem:[%s1379_s4 + $0x22] sm:$0x1]  ;;  %600 = vmatpush.msrb.mxu2 %v565_v7  ;;  %vm742_vm5 = vcmask 80896  }
 0x1c9   :  { %v273_v22 = vmul.f32 0.5, %v272_v17  ;;  %v331_v51 = vmul.f32 %v249_v48, %v1094_v43  ;;  %v576_v17 = vld [vmem:[%s1378_s3 + $0xc8] sm:$0xff]  ;;  %v559_v18 = vld [vmem:[%s1378_s3 + $0x40] sm:$0xff] }
 0x1ca   :  { %868 = vmatpush.xpose.msk.msra.mxu1 %vm189_vm11, %v336_v20  ;;  %601 = vmatpush.msrb.mxu2 %v564_v9  ;;  %v574_v20 = vld [vmem:[%s1378_s3 + $0xb8] sm:$0xff] }
 0x1cb   :  { %v274_v21 = vsub.f32 1.5, %v273_v22  ;;  %v557_v22 = vld [vmem:[%s1378_s3 + $0x30] sm:$0xff] }
 0x1cc   :  { %v934_v24 = vpop.eup %933  ;;  %602 = vmatpush.msrb.mxu2 %v563_v60 }
 0x1cd   :  { %v251_v54 = vmul.f32 %v934_v24, %v1171_v11  ;;  %v275_v30 = vmul.f32 %v932_v8, %v274_v21  ;;  %v936_v39 = vpop.eup %935  ;;  %vm257_vm6 = vweird.f32 %v934_v24  ;;  %v579_v11 = vld [vmem:[%s1378_s3 + $0xe0] sm:$0xff]  ;;  %v556_v21 = vld [vmem:[%s1378_s3 + $0x28] sm:$0xff] }
 0x1ce   :  { %869 = vmatpush.xpose.msk.msra.mxu1 %vm189_vm11, %v335_v26  ;;  %v261_v41 = vmul.f32 %v936_v39, %v1178_v16  ;;  %vm258_vm8 = vmor %vm256_vm7, %vm257_vm6  ;;  %vm267_vm9 = vweird.f32 %v936_v39  ;;  %603 = vmatpush.msrb.mxu2 %v562_v12  ;;  %v560_v16 = vld [vmem:[%s1378_s3 + $0x48] sm:$0xff]  ;;  %v571_v26 = vld [vmem:[%s1378_s3 + $0xa0] sm:$0xff]  ;;  %vm776_vm6 = vcmask 39936  }
 0x1cf   :  { %v279_v33 = vsel %vm278_vm1, %v932_v8, %v275_v30  ;;  %v252_v35 = vmul.f32 %v934_v24, %v251_v54  ;;  %vm268_vm12 = vmor %vm266_vm10, %vm267_vm9  ;;  %v581_v8 = vld [vmem:[%s1378_s3 + $0xf0] sm:$0xff]  ;;  %v570_v54 = vld [vmem:[%s1378_s3 + $0x98] sm:$0xff]  ;;  %vm708_vm1 = vcmask 1041409   ;;  %vm827_vm10 = vcmask 8192  }
 0x1d0   :  { %v334_v36 = vmul.f32 %v279_v33, %v1101_v49  ;;  %v262_v49 = vmul.f32 %v936_v39, %v261_v41  ;;  %604 = vmatpush.msrb.mxu2 %v561_v14  ;;  %v553_v30 = vld [vmem:[%s1378_s3 + $0x10] sm:$0xff]  ;;  %v567_v33 = vld [vmem:[%s1378_s3 + $0x80] sm:$0xff] }
 0x1d1   :  { %v253_v45 = vmul.f32 0.5, %v252_v35  ;;  %v408_v35 = vld [vmem:[%s1377_s2] ss:$8 sm:$0x3] }
 0x1d2   :  { %870 = vmatpush.xpose.msk.msra.mxu1 %vm189_vm11, %v334_v36  ;;  %v263_v52 = vmul.f32 0.5, %v262_v49  ;;  %605 = vmatpush.msrb.mxu2 %v560_v16  ;;  %v502_v36 = vperm.slane %v408_v35, 0  ;;  %v503_v38 = vperm.slane %v408_v35, 1  ;;  %v696_v35 = vld [vmem:[%s1379_s4 + $0x10] sm:$0x1f] }
 0x1d3   :  { %v254_v40 = vsub.f32 1.5, %v253_v45 }
 0x1d4   :  { %v264_v53 = vsub.f32 1.5, %v263_v52  ;;  %606 = vmatpush.msrb.mxu2 %v559_v18 }
 0x1d5   :  { %871 = vmatmul.msk.f32.vlgmr.msra.gmra.mxu1 %vm189_vm11, %v330_v27  ;;  %v255_v42 = vmul.f32 %v934_v24, %v254_v40 }
 0x1d6   :  { %v265_v37 = vmul.f32 %v936_v39, %v264_v53  ;;  %607 = vmatpush.msrb.mxu2 %v558_v19 }
 0x1d7   :  { %v259_v55 = vsel %vm258_vm8, %v934_v24, %v255_v42  ;;  %v572_v24 = vld [vmem:[%s1378_s3 + $0xa8] sm:$0xff] }
 0x1d8   :  { %v332_v57 = vmul.f32 %v259_v55, %v1096_v44  ;;  %v269_v43 = vsel %vm268_vm12, %v936_v39, %v265_v37  ;;  %v412_v44 = vld [vmem:[%s1377_s2 + $0x8] sm:$0xfc]  ;;  %608 = vmatpush.msrb.mxu2 %v557_v22  ;;  %v875_v39 = vld [vmem:[%s1377_s2 + $0x1] ss:$8 sm:$0x3] }
 0x1d9   :  { %v333_v58 = vmul.f32 %v269_v43, %v1098_v47  ;;  %v423_v62 = vrot.slane %v412_v44, 2  ;;  %v523_v49 = vperm.slane %v875_v39, 0  ;;  %v524_v48 = vperm.slane %v875_v39, 1 }
 0x1da   :  { %609 = vmatpush.msrb.mxu2 %v556_v21 }
 0x1db   :  { %v425_v0 = vsel %vm419_vm13, %v423_v62, %v424_v32  ;;  %v551_v32 = vld [vmem:[%s1378_s3] sm:$0xff] }
 0x1dc   :  { %487 = vmatpush.msrb.mxu3 %v425_v0  ;;  %610 = vmatpush.msrb.mxu2 %v555_v25 }
 0x1dd   :  { %872 = vmatmul.msk.f32.gmra.mxu1 %vm189_vm11, %v331_v51 }
 0x1de   :  { %886 = vmatpush.msk.msra.mxu3 %vm438_vm15, %v582_v6  ;;  %611 = vmatpush.msrb.mxu2 %v554_v29  ;;  %vm716_vm15 = vcmask 1044480  }
 0x1df   :  { %891 = vmatpush.msk.msrb.mxu1 %vm716_vm15, %v696_v35 }
 0x1e0   :  { %629 = vmatpush.msra.mxu3 %v581_v8  ;;  %612 = vmatpush.msrb.mxu2 %v553_v30 }
 0x1e2   :  { %630 = vmatpush.msra.mxu3 %v580_v10  ;;  %613 = vmatpush.msrb.mxu2 %v552_v31 }
 0x1e4   :  { %631 = vmatpush.msra.mxu3 %v579_v11  ;;  %614 = vmatpush.msrb.mxu2 %v551_v32 }
 0x1e5   :  { %873 = vmatmul.msk.f32.gmra.mxu1 %vm189_vm11, %v332_v57 }
 0x1e6   :  { %632 = vmatpush.msra.mxu3 %v578_v13 }
 0x1e8   :  { %633 = vmatpush.msra.mxu3 %v577_v15 }
 0x1ea   :  { %634 = vmatpush.msra.mxu3 %v576_v17 }
 0x1ec   :  { %635 = vmatpush.msra.mxu3 %v575_v56 }
 0x1ed   :  { %874 = vmatmul.msk.f32.gmra.mxu1 %vm189_vm11, %v333_v58  ;;  %vm583_vm11 = vcmask 1014784  }
 0x1ee   :  { %636 = vmatpush.msra.mxu3 %v574_v20 }
 0x1f0   :  { %637 = vmatpush.msra.mxu3 %v573_v23 }
 0x1f2   :  { %638 = vmatpush.msra.mxu3 %v572_v24 }
 0x1f4   :  { %639 = vmatpush.msra.mxu3 %v571_v26 }
 0x1f6   :  { %640 = vmatpush.msra.mxu3 %v570_v54 }
 0x1f8   :  { %641 = vmatpush.msra.mxu3 %v569_v28 }
 0x1fa   :  { %642 = vmatpush.msra.mxu3 %v568_v50 }
 0x1fc   :  { %643 = vmatpush.msra.mxu3 %v567_v33 }
 0x252   :  { %v387_v1 = vpop.f32.mrf.mxu1 }
 0x253   :  { %877 = vmatmul.msk.f32.vlgmr.msra.gmra.mxu2 %vm428_vm14, %v387_v1  ;;  %882 = vmatmul.msk.f32.vlgmr.msrb.gmra.mxu3 %vm428_vm14, %v387_v1 }
 0x25a   :  { %v390_v47 = vpop.f32.mrf.mxu1 }
 0x25b   :  { %400 = vrot.lane.b32.xlu1 %v390_v47, %s993_s10 }
 0x262   :  { %v393_v3 = vpop.f32.mrf.mxu1 }
 0x263   :  { %773 = vperm.xlu1 %913, %v702_v2   ;;  %403 = vrot.lane.b32.xlu2 %v393_v3, %s994_s13 }
 0x26a   :  { %v396_v4 = vpop.f32.mrf.mxu1 }
 0x26b   :  { %406 = vrot.lane.b32.xlu0 %v396_v4, %s995_s14 }
 0x2bd   :  { %v404_v27 = vpop.permute.xlu2 %403 }
 0x2cd   :  { %v401_v34 = vpop.permute.xlu1 %400 }
 0x2ce   :  { %878 = vmatmul.msk.f32.gmra.mxu2 %vm428_vm14, %v401_v34  ;;  %883 = vmatmul.msk.f32.gmra.mxu3 %vm428_vm14, %v401_v34 }
 0x2d6   :  { %v460_v41 = vpop.f32.mrf.mxu2  ;;  %879 = vmatmul.msk.f32.gmra.mxu2 %vm428_vm14, %v404_v27  ;;  %v489_v45 = vpop.f32.mrf.mxu3  ;;  %884 = vmatmul.msk.f32.gmra.mxu3 %vm428_vm14, %v404_v27 }
 0x2d7   :  { %v506_v46 = vsub.f32 %v460_v41, %v502_v36  ;;  %v507_v40 = vsub.f32 %v489_v45, %v503_v38  ;;  %v694_v45 = vld [vmem:[%s1379_s4] sm:$0xff] }
 0x2d9   :  { %v514_v51 = vmul.f32 %v506_v46, %v506_v46  ;;  %v515_v52 = vmul.f32 %v507_v40, %v507_v40 }
 0x2db   :  { %v527_v42 = vmul.f32 %v523_v49, %v514_v51  ;;  %v528_v53 = vmul.f32 %v524_v48, %v515_v52 }
 0x2dd   :  { %v535_v55 = vmul.f32 1.442695, %v527_v42  ;;  %v537_v57 = vmul.f32 1.442695, %v528_v53  ;;  %v407_v37 = vpop.permute.xlu0 %406 }
 0x2de   :  { %880 = vmatmul.msk.f32.gmra.mxu2 %vm428_vm14, %v407_v37  ;;  %885 = vmatmul.msk.f32.gmra.mxu3 %vm428_vm14, %v407_v37 }
 0x2df   :  { %937 = vpow2.f32 %v535_v55 }
 0x2e0   :  { %939 = vpow2.f32 %v537_v57 }
 0x2e5   :  { %v938_v43 = vpop.eup %937 }
 0x2e6   :  { %v940_v58 = vpop.eup %939  ;;  %615 = vmatmul.f32.vlgmr.msrb.gmra.mxu2 %v938_v43 }
 0x2e7   :  { %887 = vmatmul.msk.f32.vlgmr.msra.gmra.mxu3 %vm583_vm11, %v940_v58 }
 0x351   :  { %v463_v59 = vpop.f32.mrf.mxu2  ;;  %v492_v44 = vpop.f32.mrf.mxu3 }
 0x352   :  { %v508_v61 = vsub.f32 %v463_v59, %v502_v36  ;;  %v509_v62 = vsub.f32 %v492_v44, %v503_v38 }
 0x354   :  { %v516_v63 = vmul.f32 %v508_v61, %v508_v61  ;;  %v517_v0 = vmul.f32 %v509_v62, %v509_v62 }
 0x356   :  { %v529_v1 = vmul.f32 %v523_v49, %v516_v63  ;;  %v530_v47 = vmul.f32 %v524_v48, %v517_v0 }
 0x358   :  { %v539_v2 = vmul.f32 1.442695, %v529_v1  ;;  %v541_v3 = vmul.f32 1.442695, %v530_v47 }
 0x359   :  { %v466_v4 = vpop.f32.mrf.mxu2  ;;  %v495_v5 = vpop.f32.mrf.mxu3 }
 0x35a   :  { %941 = vpow2.f32 %v539_v2  ;;  %v510_v6 = vsub.f32 %v466_v4, %v502_v36  ;;  %v511_v7 = vsub.f32 %v495_v5, %v503_v38 }
 0x35b   :  { %943 = vpow2.f32 %v541_v3 }
 0x35c   :  { %v518_v8 = vmul.f32 %v510_v6, %v510_v6  ;;  %v519_v9 = vmul.f32 %v511_v7, %v511_v7 }
 0x35e   :  { %v531_v10 = vmul.f32 %v523_v49, %v518_v8  ;;  %v532_v60 = vmul.f32 %v524_v48, %v519_v9 }
 0x360   :  { %v942_v11 = vpop.eup %941  ;;  %v543_v12 = vmul.f32 1.442695, %v531_v10  ;;  %v545_v13 = vmul.f32 1.442695, %v532_v60 }
 0x361   :  { %v944_v14 = vpop.eup %943  ;;  %v469_v15 = vpop.f32.mrf.mxu2  ;;  %618 = vmatmul.f32.gmra.mxu2 %v942_v11 }
 0x362   :  { %v498_v16 = vpop.f32.mrf.mxu3  ;;  %945 = vpow2.f32 %v543_v12  ;;  %v512_v17 = vsub.f32 %v469_v15, %v502_v36  ;;  %888 = vmatmul.msk.f32.gmra.mxu3 %vm583_vm11, %v944_v14  ;;  %v695_v36 = vld [vmem:[%s1379_s4 + $0x8] sm:$0xff] }
 0x363   :  { %v513_v18 = vsub.f32 %v498_v16, %v503_v38  ;;  %947 = vpow2.f32 %v545_v13  ;;  %734 = vmatpush.msrb.mxu1 %v695_v36 }
 0x364   :  { %v520_v56 = vmul.f32 %v512_v17, %v512_v17 }
 0x365   :  { %v521_v19 = vmul.f32 %v513_v18, %v513_v18  ;;  %735 = vmatpush.msrb.mxu1 %v694_v45 }
 0x366   :  { %v533_v20 = vmul.f32 %v523_v49, %v520_v56 }
 0x367   :  { %v534_v22 = vmul.f32 %v524_v48, %v521_v19 }
 0x368   :  { %v946_v23 = vpop.eup %945  ;;  %v547_v21 = vmul.f32 1.442695, %v533_v20 }
 0x369   :  { %v549_v24 = vmul.f32 1.442695, %v534_v22  ;;  %v948_v25 = vpop.eup %947  ;;  %621 = vmatmul.f32.gmra.mxu2 %v946_v23  ;;  %v616_v54 = vpop.f32.mrf.mxu2  ;;  %v699_v23 = vld [vmem:[%s1379_s4 + $0x1e] sm:$0x3] }
 0x36a   :  { %949 = vpow2.f32 %v547_v21  ;;  %889 = vmatmul.msk.f32.gmra.mxu3 %vm583_vm11, %v948_v25  ;;  %v645_v30 = vpop.f32.mrf.mxu3  ;;  %v617_v28 = vadd.f32 1.0, %v616_v54  ;;  %v698_v21 = vld [vmem:[%s1379_s4 + $0x16] sm:$0xff]  ;;  %893 = vmatpush.msk.msra.mxu1 %vm746_vm4, %v699_v23  ;;  %v916_v54 = vld [vmem:[%s1379_s4 + $0x20] ss:$0 sm:$0xff] }
 0x36b   :  { %951 = vpow2.f32 %v549_v24  ;;  %v915_v24 = vld [vmem:[%s1379_s4 + $0x15] ss:$0 sm:$0xff] }
 0x36c   :  { %v646_v31 = vadd.f32 %v645_v30, %v617_v28  ;;  %765 = vmatpush.msra.mxu1 %v698_v21 }
 0x36e   :  { %953 = vlog2.f32 %v646_v31 }
 0x370   :  { %v950_v26 = vpop.eup %949 }
 0x371   :  { %v952_v29 = vpop.eup %951  ;;  %624 = vmatmul.f32.gmra.mxu2 %v950_v26 }
 0x372   :  { %890 = vmatmul.msk.f32.gmra.mxu3 %vm583_vm11, %v952_v29 }
 0x374   :  { %v954_v39 = vpop.eup %953 }
 0x375   :  { %v658_v40 = vmul.f32 0.6931472, %v954_v39 }
 0x377   :  { %v666_v52 = vsel %vm665_vm0, %v658_v40, 0.0 }
 0x378   :  { %v667_v43 = vrot.slane %v666_v52, 4 }
 0x37a   :  { %v668_v62 = vadd.f32 %v667_v43, %v666_v52 }
 0x37c   :  { %v669_v2 = vrot.slane %v668_v62, 2 }
 0x37e   :  { %v670_v8 = vadd.f32 %v669_v2, %v668_v62 }
 0x380   :  { %v671_v12 = vrot.slane %v670_v8, 1 }
 0x382   :  { %v672_v17 = vadd.f32 %v671_v12, %v670_v8 }
 0x3e4   :  { %v619_v50 = vpop.f32.mrf.mxu2 }
 0x3e5   :  { %v620_v32 = vadd.f32 1.0, %v619_v50  ;;  %v648_v33 = vpop.f32.mrf.mxu3  ;;  %v701_v50 = vld [vmem:[%s1379_s4 + $0x21] sm:$0x1]  ;;  %s997_s4 = smov [#allocation2]  }
 0x3e6   :  { %s834_s17 = sshll.u32 %s997_s4, 4  ;;  %s835_s17 = int_to_ptr.vmem [resolvable:$true] %s834_s17 }
 0x3e7   :  { %v649_v34 = vadd.f32 %v648_v33, %v620_v32  ;;  %v774_v32 = vpop.permute.xlu1 %773 }
 0x3e9   :  { %955 = vlog2.f32 %v649_v34 }
 0x3ec   :  { %v622_v38 = vpop.f32.mrf.mxu2 }
 0x3ed   :  { %v623_v27 = vadd.f32 1.0, %v622_v38  ;;  %v651_v41 = vpop.f32.mrf.mxu3 }
 0x3ef   :  { %v956_v46 = vpop.eup %955  ;;  %v652_v49 = vadd.f32 %v651_v41, %v623_v27 }
 0x3f0   :  { %v660_v48 = vmul.f32 0.6931472, %v956_v46 }
 0x3f1   :  { %957 = vlog2.f32 %v652_v49 }
 0x3f2   :  { %v673_v51 = vsel %vm665_vm0, %v660_v48, 0.0 }
 0x3f3   :  { %v674_v53 = vrot.slane %v673_v51, 4 }
 0x3f4   :  { %v625_v42 = vpop.f32.mrf.mxu2 }
 0x3f5   :  { %v626_v55 = vadd.f32 1.0, %v625_v42  ;;  %v654_v57 = vpop.f32.mrf.mxu3  ;;  %v675_v44 = vadd.f32 %v674_v53, %v673_v51 }
 0x3f7   :  { %v958_v37 = vpop.eup %957  ;;  %v655_v58 = vadd.f32 %v654_v57, %v626_v55  ;;  %v676_v0 = vrot.slane %v675_v44, 2 }
 0x3f8   :  { %v662_v59 = vmul.f32 0.6931472, %v958_v37 }
 0x3f9   :  { %959 = vlog2.f32 %v655_v58  ;;  %v677_v5 = vadd.f32 %v676_v0, %v675_v44 }
 0x3fa   :  { %v680_v61 = vsel %vm665_vm0, %v662_v59, 0.0 }
 0x3fb   :  { %v681_v63 = vrot.slane %v680_v61, 4  ;;  %v678_v10 = vrot.slane %v677_v5, 1 }
 0x3fd   :  { %v682_v1 = vadd.f32 %v681_v63, %v680_v61  ;;  %v679_v14 = vadd.f32 %v678_v10, %v677_v5 }
 0x3ff   :  { %v960_v47 = vpop.eup %959  ;;  %v683_v3 = vrot.slane %v682_v1, 2  ;;  %v709_v19 = vsel %vm708_vm1, %v679_v14, %v672_v17 }
 0x400   :  { %v664_v4 = vmul.f32 0.6931472, %v960_v47 }
 0x401   :  { %v684_v6 = vadd.f32 %v683_v3, %v682_v1 }
 0x402   :  { %v687_v7 = vsel %vm665_vm0, %v664_v4, 0.0 }
 0x403   :  { %v688_v9 = vrot.slane %v687_v7, 4  ;;  %v685_v11 = vrot.slane %v684_v6, 1 }
 0x405   :  { %v689_v60 = vadd.f32 %v688_v9, %v687_v7  ;;  %v686_v16 = vadd.f32 %v685_v11, %v684_v6 }
 0x407   :  { %v690_v13 = vrot.slane %v689_v60, 2  ;;  %v711_v20 = vsel %vm710_vm2, %v686_v16, %v709_v19 }
 0x409   :  { %v691_v15 = vadd.f32 %v690_v13, %v689_v60 }
 0x40b   :  { %v692_v18 = vrot.slane %v691_v15, 1 }
 0x40d   :  { %v693_v56 = vadd.f32 %v692_v18, %v691_v15 }
 0x40f   :  { %v713_v22 = vsel %vm712_vm3, %v693_v56, %v711_v20 }
 0x410   :  { %892 = vmatmul.msk.f32.vlgmr.msrb.gmra.mxu1 %vm665_vm0, %v713_v22 }
 0x48d   :  { %v737_v25 = vpop.f32.mrf.mxu1 }
 0x48e   :  { %v738_v26 = vadd.f32 %v915_v24, %v737_v25 }
 0x490   :  { %v740_v29 = vmax.f32 %v738_v26, 0.0 }
 0x492   :  { %894 = vmatmul.msk.f32.vlgmr.msra.gmra.mxu1 %vm742_vm5, %v740_v29 }
 0x50f   :  { %v767_v30 = vpop.f32.mrf.mxu1 }
 0x510   :  { %v768_v28 = vadd.f32 %v916_v54, %v767_v30 }
 0x512   :  { %v770_v31 = vmax.f32 %v768_v28, 0.0 }
 0x514   :  { %895 = vmatpush.xpose.msk.msra.mxu2 %vm776_vm6, %v770_v31 }
 0x517   :  { %896 = vmatmul.msk.f32.vlgmr.msra.gmra.mxu2 %vm776_vm6, %v701_v50 }
 0x59a   :  { %v800_v33 = vpop.f32.mrf.mxu2 }
 0x59b   :  { %v801_v34 = vadd.f32 %v800_v33, %v774_v32 }
 0x59d   :  { %804 = vrot.lane.b32.xlu0 %v801_v34, %s996_s16 }
 0x60f   :  { %v805_v35 = vpop.permute.xlu0 %804 }
 0x610   :  { %v807_v36 = vsub.f32 %v801_v34, %v805_v35 }
 0x612   :  { %v808_v38 = vsub.f32 0.0, %v807_v36 }
 0x614   :  { %v809_v39 = vmul.f32 1.442695, %v808_v38 }
 0x616   :  { %961 = vpow2.f32 %v809_v39 }
 0x61c   :  { %v962_v27 = vpop.eup %961 }
 0x61d   :  { %v811_v41 = vadd.f32 1.0, %v962_v27 }
 0x61f   :  { %963 = vrcp.f32 %v811_v41  ;;  %v823_v40 = vand.u32 2147483648, %v811_v41  ;;  %v821_v51 = vand.u32 2147483647, %v811_v41  ;;  %vm817_vm8 = vweird.f32 %v811_v41 }
 0x621   :  { %v824_v42 = vor.u32 1.1754944e-38, %v823_v40  ;;  %vm822_vm12 = vcmp.eq.f32.partialorder %v821_v51, 8.507059e+37 }
 0x625   :  { %v964_v45 = vpop.eup %963 }
 0x626   :  { %v813_v46 = vmul.f32 %v964_v45, %v811_v41  ;;  %vm818_vm7 = vweird.f32 %v964_v45 }
 0x627   :  { %vm819_vm9 = vmor %vm817_vm8, %vm818_vm7 }
 0x628   :  { %v814_v49 = vsub.f32 1.0, %v813_v46 }
 0x62a   :  { %v815_v48 = vmul.f32 %v964_v45, %v814_v49 }
 0x62c   :  { %v816_v52 = vadd.f32 %v964_v45, %v815_v48 }
 0x62e   :  { %v820_v53 = vsel %vm819_vm9, %v964_v45, %v816_v52 }
 0x62f   :  { %v825_v55 = vsel %vm822_vm12, %v824_v42, %v820_v53 }
 0x630   :  { %828 = vst.msk [vmem:[#allocation2] sm:$0x1] %vm827_vm10, %v825_v55 }
 0x631   :  { %839 = dma.vmem_to_hbm [thread:$0]  %s835_s17, 16, %s837_s20, [#allocation3]  }
 0x632   :  { %989 = dma.done.wait [#allocation3], 16  }
 0x633   :  { %990 = vsyncadd [#allocation3], 4294967280 }
 0x634   :  { %844 = vsyncpa [#allocation3], 1 }

</bundles_post_ra>
